<compile_context>
chip_gen: v7x
topology: tpu7x:2x2x1
jax: 0.10.0
libtpu: 0.0.40
codegen_flags: <defaults>
</compile_context>

<pallas_src>
import functools

import jax
import jax.numpy as jnp
from jax.experimental import pallas as pl
from jax.experimental.pallas import tpu as pltpu

INPUT_SIZE = 16
HIDDEN = 128
OUT = 1
NSTAGE = 4


def net_kernel(x_ref, wbig_ref, bbig_ref, wo_ref, bo_ref,
               o1_ref, o2_ref, o3_ref, o4_ref):
    # x_ref   : [TB, 64]   f32    (x reshaped to [B, 4*16]; bf16 cast in-kernel)
    # wbig_ref: [64, 512]  bf16   (block-diagonal i2h weights)
    # bbig_ref: [1, 512]   f32    (i2h biases, flattened)
    # wo_ref  : [4, 128]   f32    (h2o weights, lane-major)
    # bo_ref  : [1, 4]     f32    (h2o biases)
    # oK_ref  : [TB, 1]    f32    (per-stage outputs)

    x = x_ref[...].astype(jnp.bfloat16)               # in-kernel cast (no extra HBM pass)
    a = jnp.dot(x, wbig_ref[...], preferred_element_type=jnp.float32)
    a = jnp.maximum(a + bbig_ref[...], 0.0)           # [TB, 512]

    wo = wo_ref[...]                                   # [4, 128]
    bo = bo_ref[...]                                   # [1, 4]
    out_refs = (o1_ref, o2_ref, o3_ref, o4_ref)

    # Hidden carry = cumulative sum over the 4 lane-aligned 128-wide blocks.
    # h2o = VPU multiply + lane reduction (no degenerate N=1 matmuls).
    h = a[:, 0:HIDDEN]
    for s in range(NSTAGE):
        if s > 0:
            h = h + a[:, s * HIDDEN:(s + 1) * HIDDEN]
        col = jnp.sum(h * wo[s:s + 1, :], axis=-1, keepdims=True)  # [TB, 1]
        out_refs[s][...] = jnp.maximum(col + bo[:, s:s + 1], 0.0)


def pack_params(wi, bi, wo, bo):
    """One-time layout plumbing (call at init; NOT in the per-step hot path).

    wi: [4, 16, 128] (stage, in, out) -> block-diagonal [64, 512] bf16
    bi: [4, 128]                      -> [1, 512] f32
    wo: [4, 128, 1]                   -> [4, 128] f32 (lane-major)
    bo: [4, 1]                        -> [1, 4]  f32
    """
    wbig = jnp.zeros((NSTAGE * INPUT_SIZE, NSTAGE * HIDDEN), jnp.float32)
    for s in range(NSTAGE):
        wbig = wbig.at[s * INPUT_SIZE:(s + 1) * INPUT_SIZE,
                       s * HIDDEN:(s + 1) * HIDDEN].set(wi[s])
    wbig = wbig.astype(jnp.bfloat16)
    bbig = bi.reshape(1, NSTAGE * HIDDEN).astype(jnp.float32)
    wo2 = wo[..., 0].astype(jnp.float32)               # [4, 128]
    bo2 = bo.reshape(1, NSTAGE).astype(jnp.float32)
    return wbig, bbig, wo2, bo2


def _pick_tb(batch, tb):
    """Batch tile: multiple of 8 sublanes; >=2 grid steps when batch allows."""
    tb = max(8, (tb // 8) * 8)
    if batch <= 8:
        return batch                                   # single full-array block
    half = -(-batch // 2)                              # cdiv(batch, 2)
    half = -(-half // 8) * 8                           # round up to multiple of 8
    return min(tb, half)


@functools.partial(jax.jit, static_argnames=("tb",))
def net_forward(x, wbig, bbig, wo2, bo2, *, tb=2048):
    """x: [B, 4, 16] f32; packed params from pack_params.

    Returns a tuple of 4 arrays shaped [B, 1, 1] (out1..out4)."""
    B = x.shape[0]
    x_flat = x.reshape(B, NSTAGE * INPUT_SIZE)         # stays f32; cast in kernel

    TB = _pick_tb(B, tb)
    grid = (pl.cdiv(B, TB),)

    out_sds = jax.ShapeDtypeStruct((B, OUT), jnp.float32)
    out_spec = pl.BlockSpec((TB, OUT), lambda i: (i, 0))

    outs = pl.pallas_call(
        net_kernel,
        out_shape=(out_sds,) * NSTAGE,
        grid_spec=pltpu.PrefetchScalarGridSpec(
            num_scalar_prefetch=0,
            grid=grid,
            in_specs=[
                pl.BlockSpec((TB, NSTAGE * INPUT_SIZE), lambda i: (i, 0)),
                # weights / biases: constant blocks -> VMEM-resident across grid
                pl.BlockSpec((NSTAGE * INPUT_SIZE, NSTAGE * HIDDEN),
                             lambda i: (0, 0)),
                pl.BlockSpec((1, NSTAGE * HIDDEN), lambda i: (0, 0)),
                pl.BlockSpec((NSTAGE, HIDDEN), lambda i: (0, 0)),
                pl.BlockSpec((1, NSTAGE), lambda i: (0, 0)),
            ],
            out_specs=[out_spec] * NSTAGE,
        ),
        compiler_params=pltpu.CompilerParams(
            dimension_semantics=("parallel",)),
    )(x_flat, wbig, bbig, wo2, bo2)

    # [B,1] -> [B,1,1] is a bitcast reshape: no data movement, no extra kernels.
    return tuple(o.reshape(B, 1, 1) for o in outs)


def net_ref(x, wi, bi, wo, bo):
    """Pure-JAX reference mirroring the PyTorch forward (all f32)."""
    outs = []
    h = None
    for s in range(NSTAGE):
        xs = x[:, s, :]
        h_new = jax.nn.relu(xs @ wi[s] + bi[s])
        if s > 0:
            h_new = h_new + h
        h = h_new
        outs.append(jax.nn.relu(h @ wo[s] + bo[s]).reshape(x.shape[0], 1, 1))
    return tuple(outs)


def init_params(key):
    """Deterministic synthetic parameters (shapes from the nn.Linear defs)."""
    k1, k2, k3, k4 = jax.random.split(key, 4)
    bnd_i = 1.0 / jnp.sqrt(INPUT_SIZE)
    bnd_o = 1.0 / jnp.sqrt(HIDDEN)
    wi = jax.random.uniform(k1, (NSTAGE, INPUT_SIZE, HIDDEN), jnp.float32, -bnd_i, bnd_i)
    bi = jax.random.uniform(k2, (NSTAGE, HIDDEN), jnp.float32, -bnd_i, bnd_i)
    wo = jax.random.uniform(k3, (NSTAGE, HIDDEN, OUT), jnp.float32, -bnd_o, bnd_o)
    bo = jax.random.uniform(k4, (NSTAGE, OUT), jnp.float32, -bnd_o, bnd_o)
    return wi, bi, wo, bo


if __name__ == "__main__":
    key = jax.random.PRNGKey(0)
    k_x, k_x2, k_p = jax.random.split(key, 3)

    wi, bi, wo, bo = init_params(k_p)
    packed = pack_params(wi, bi, wo, bo)      # one-time packing (out of hot path)

    def check(x):
        B = x.shape[0]
        outs = jax.block_until_ready(net_forward(x, *packed))
        # Reference matched to the kernel's mixed precision (bf16 matmul inputs,
        # f32 accumulate/bias) -> tight tolerance; plus pure-f32 PyTorch parity.
        x_q = x.astype(jnp.bfloat16).astype(jnp.float32)
        wi_q = wi.astype(jnp.bfloat16).astype(jnp.float32)
        refs_bf16 = net_ref(x_q, wi_q, bi, wo, bo)
        refs_f32 = net_ref(x, wi, bi, wo, bo)
        for o, rb, rf in zip(outs, refs_bf16, refs_f32):
            assert o.shape == (B, 1, 1)
            assert jnp.allclose(o, rb, atol=1e-4, rtol=1e-4)
            assert jnp.allclose(o, rf, atol=3e-2, rtol=3e-2)

    # Small shape implied by the module (batch=2, 4 stages, 16 features).
    x = jax.random.normal(k_x, (2, NSTAGE, INPUT_SIZE), dtype=jnp.float32)
    check(x)

    # Ragged-edge / multi-step-grid check (B not a multiple of the batch tile).
    x2 = jax.random.normal(k_x2, (13, NSTAGE, INPUT_SIZE), dtype=jnp.float32)
    check(x2)

    print("KERNEL_OK")
</pallas_src>

<mosaic_0001>
module attributes {stable_mosaic.version = 11 : i64} {
  func.func @net_kernel(%arg0: i32, %arg1: memref<2x64xf32, #tpu.memory_space<vmem>>, %arg2: memref<64x512xbf16, #tpu.memory_space<vmem>>, %arg3: memref<1x512xf32, #tpu.memory_space<vmem>>, %arg4: memref<4x128xf32, #tpu.memory_space<vmem>>, %arg5: memref<1x4xf32, #tpu.memory_space<vmem>>, %arg6: memref<2x1xf32, #tpu.memory_space<vmem>>, %arg7: memref<2x1xf32, #tpu.memory_space<vmem>>, %arg8: memref<2x1xf32, #tpu.memory_space<vmem>>, %arg9: memref<2x1xf32, #tpu.memory_space<vmem>>) attributes {dimension_semantics = [#tpu.dimension_semantics<parallel>], iteration_bounds = array<i64: 1>, scalar_prefetch = 0 : i64, scratch_operands = 0 : i64, tpu.core_type = #tpu.core_type<tc>, window_params = [{transform_indices = @transform_0, window_bounds = array<i64: 2, 64>}, {pipeline_mode = #tpu.pipeline_mode<synchronous>, transform_indices = @transform_1, window_bounds = array<i64: 64, 512>}, {pipeline_mode = #tpu.pipeline_mode<synchronous>, transform_indices = @transform_2, window_bounds = array<i64: 1, 512>}, {pipeline_mode = #tpu.pipeline_mode<synchronous>, transform_indices = @transform_3, window_bounds = array<i64: 4, 128>}, {pipeline_mode = #tpu.pipeline_mode<synchronous>, transform_indices = @transform_4, window_bounds = array<i64: 1, 4>}, {transform_indices = @transform_5, window_bounds = array<i64: 2, 1>}, {transform_indices = @transform_6, window_bounds = array<i64: 2, 1>}, {transform_indices = @transform_7, window_bounds = array<i64: 2, 1>}, {transform_indices = @transform_8, window_bounds = array<i64: 2, 1>}]} {
    %c0 = arith.constant 0 : index
    %c0_0 = arith.constant 0 : index
    %0 = vector.load %arg1[%c0, %c0_0] : memref<2x64xf32, #tpu.memory_space<vmem>>, vector<2x64xf32>
    %1 = arith.truncf %0 : vector<2x64xf32> to vector<2x64xbf16>
    %c0_1 = arith.constant 0 : index
    %c0_2 = arith.constant 0 : index
    %2 = vector.load %arg2[%c0_1, %c0_2] : memref<64x512xbf16, #tpu.memory_space<vmem>>, vector<64x512xbf16>
    %cst = arith.constant dense<0.000000e+00> : vector<2x512xf32>
    %3 = tpu.matmul %1, %2, %cst {dimension_numbers = #tpu.dot_dimension_numbers<[1], [0], [0], [1], [0, 0, 1, 1], [], []>} : vector<2x64xbf16>, vector<64x512xbf16>, vector<2x512xf32> -> vector<2x512xf32>
    %c0_3 = arith.constant 0 : index
    %c0_4 = arith.constant 0 : index
    %4 = vector.load %arg3[%c0_3, %c0_4] : memref<1x512xf32, #tpu.memory_space<vmem>>, vector<1x512xf32>
    %5 = vector.broadcast %4 : vector<1x512xf32> to vector<2x512xf32>
    %6 = arith.addf %3, %5 : vector<2x512xf32>
    %cst_5 = arith.constant 0.000000e+00 : f32
    %7 = vector.broadcast %cst_5 : f32 to vector<2x512xf32>
    %8 = arith.maximumf %6, %7 : vector<2x512xf32>
    %c0_6 = arith.constant 0 : index
    %c0_7 = arith.constant 0 : index
    %9 = vector.load %arg4[%c0_6, %c0_7] : memref<4x128xf32, #tpu.memory_space<vmem>>, vector<4x128xf32>
    %c0_8 = arith.constant 0 : index
    %c0_9 = arith.constant 0 : index
    %10 = vector.load %arg5[%c0_8, %c0_9] : memref<1x4xf32, #tpu.memory_space<vmem>>, vector<1x4xf32>
    %11 = vector.extract_strided_slice %8 {offsets = [0, 0], sizes = [2, 128], strides = [1, 1]} : vector<2x512xf32> to vector<2x128xf32>
    %12 = vector.extract_strided_slice %9 {offsets = [0, 0], sizes = [1, 128], strides = [1, 1]} : vector<4x128xf32> to vector<1x128xf32>
    %13 = vector.broadcast %12 : vector<1x128xf32> to vector<2x128xf32>
    %14 = arith.mulf %11, %13 : vector<2x128xf32>
    %cst_10 = arith.constant dense<0.000000e+00> : vector<2xf32>
    %15 = vector.multi_reduction <add>, %14, %cst_10 [1] : vector<2x128xf32> to vector<2xf32>
    %16 = vector.shape_cast %15 : vector<2xf32> to vector<2x1xf32>
    %17 = vector.extract_strided_slice %10 {offsets = [0, 0], sizes = [1, 1], strides = [1, 1]} : vector<1x4xf32> to vector<1x1xf32>
    %18 = vector.broadcast %17 : vector<1x1xf32> to vector<2x1xf32>
    %19 = arith.addf %16, %18 : vector<2x1xf32>
    %cst_11 = arith.constant 0.000000e+00 : f32
    %20 = vector.broadcast %cst_11 : f32 to vector<2x1xf32>
    %21 = arith.maximumf %19, %20 : vector<2x1xf32>
    %c0_12 = arith.constant 0 : index
    %c0_13 = arith.constant 0 : index
    %22 = vector.load %arg6[%c0_12, %c0_13] : memref<2x1xf32, #tpu.memory_space<vmem>>, vector<2x1xf32>
    tpu.vector_store %arg6[%c0_12, %c0_13], %21 {strides = array<i32>} : memref<2x1xf32, #tpu.memory_space<vmem>>, vector<2x1xf32>,
    %23 = vector.extract_strided_slice %8 {offsets = [0, 128], sizes = [2, 128], strides = [1, 1]} : vector<2x512xf32> to vector<2x128xf32>
    %24 = arith.addf %11, %23 : vector<2x128xf32>
    %25 = vector.extract_strided_slice %9 {offsets = [1, 0], sizes = [1, 128], strides = [1, 1]} : vector<4x128xf32> to vector<1x128xf32>
    %26 = vector.broadcast %25 : vector<1x128xf32> to vector<2x128xf32>
    %27 = arith.mulf %24, %26 : vector<2x128xf32>
    %cst_14 = arith.constant dense<0.000000e+00> : vector<2xf32>
    %28 = vector.multi_reduction <add>, %27, %cst_14 [1] : vector<2x128xf32> to vector<2xf32>
    %29 = vector.shape_cast %28 : vector<2xf32> to vector<2x1xf32>
    %30 = vector.extract_strided_slice %10 {offsets = [0, 1], sizes = [1, 1], strides = [1, 1]} : vector<1x4xf32> to vector<1x1xf32>
    %31 = vector.broadcast %30 : vector<1x1xf32> to vector<2x1xf32>
    %32 = arith.addf %29, %31 : vector<2x1xf32>
    %cst_15 = arith.constant 0.000000e+00 : f32
    %33 = vector.broadcast %cst_15 : f32 to vector<2x1xf32>
    %34 = arith.maximumf %32, %33 : vector<2x1xf32>
    %c0_16 = arith.constant 0 : index
    %c0_17 = arith.constant 0 : index
    %35 = vector.load %arg7[%c0_16, %c0_17] : memref<2x1xf32, #tpu.memory_space<vmem>>, vector<2x1xf32>
    tpu.vector_store %arg7[%c0_16, %c0_17], %34 {strides = array<i32>} : memref<2x1xf32, #tpu.memory_space<vmem>>, vector<2x1xf32>,
    %36 = vector.extract_strided_slice %8 {offsets = [0, 256], sizes = [2, 128], strides = [1, 1]} : vector<2x512xf32> to vector<2x128xf32>
    %37 = arith.addf %24, %36 : vector<2x128xf32>
    %38 = vector.extract_strided_slice %9 {offsets = [2, 0], sizes = [1, 128], strides = [1, 1]} : vector<4x128xf32> to vector<1x128xf32>
    %39 = vector.broadcast %38 : vector<1x128xf32> to vector<2x128xf32>
    %40 = arith.mulf %37, %39 : vector<2x128xf32>
    %cst_18 = arith.constant dense<0.000000e+00> : vector<2xf32>
    %41 = vector.multi_reduction <add>, %40, %cst_18 [1] : vector<2x128xf32> to vector<2xf32>
    %42 = vector.shape_cast %41 : vector<2xf32> to vector<2x1xf32>
    %43 = vector.extract_strided_slice %10 {offsets = [0, 2], sizes = [1, 1], strides = [1, 1]} : vector<1x4xf32> to vector<1x1xf32>
    %44 = vector.broadcast %43 : vector<1x1xf32> to vector<2x1xf32>
    %45 = arith.addf %42, %44 : vector<2x1xf32>
    %cst_19 = arith.constant 0.000000e+00 : f32
    %46 = vector.broadcast %cst_19 : f32 to vector<2x1xf32>
    %47 = arith.maximumf %45, %46 : vector<2x1xf32>
    %c0_20 = arith.constant 0 : index
    %c0_21 = arith.constant 0 : index
    %48 = vector.load %arg8[%c0_20, %c0_21] : memref<2x1xf32, #tpu.memory_space<vmem>>, vector<2x1xf32>
    tpu.vector_store %arg8[%c0_20, %c0_21], %47 {strides = array<i32>} : memref<2x1xf32, #tpu.memory_space<vmem>>, vector<2x1xf32>,
    %49 = vector.extract_strided_slice %8 {offsets = [0, 384], sizes = [2, 128], strides = [1, 1]} : vector<2x512xf32> to vector<2x128xf32>
    %50 = arith.addf %37, %49 : vector<2x128xf32>
    %51 = vector.extract_strided_slice %9 {offsets = [3, 0], sizes = [1, 128], strides = [1, 1]} : vector<4x128xf32> to vector<1x128xf32>
    %52 = vector.broadcast %51 : vector<1x128xf32> to vector<2x128xf32>
    %53 = arith.mulf %50, %52 : vector<2x128xf32>
    %cst_22 = arith.constant dense<0.000000e+00> : vector<2xf32>
    %54 = vector.multi_reduction <add>, %53, %cst_22 [1] : vector<2x128xf32> to vector<2xf32>
    %55 = vector.shape_cast %54 : vector<2xf32> to vector<2x1xf32>
    %56 = vector.extract_strided_slice %10 {offsets = [0, 3], sizes = [1, 1], strides = [1, 1]} : vector<1x4xf32> to vector<1x1xf32>
    %57 = vector.broadcast %56 : vector<1x1xf32> to vector<2x1xf32>
    %58 = arith.addf %55, %57 : vector<2x1xf32>
    %cst_23 = arith.constant 0.000000e+00 : f32
    %59 = vector.broadcast %cst_23 : f32 to vector<2x1xf32>
    %60 = arith.maximumf %58, %59 : vector<2x1xf32>
    %c0_24 = arith.constant 0 : index
    %c0_25 = arith.constant 0 : index
    %61 = vector.load %arg9[%c0_24, %c0_25] : memref<2x1xf32, #tpu.memory_space<vmem>>, vector<2x1xf32>
    tpu.vector_store %arg9[%c0_24, %c0_25], %60 {strides = array<i32>} : memref<2x1xf32, #tpu.memory_space<vmem>>, vector<2x1xf32>,
    return
  }
  func.func @transform_0(%arg0: i32) -> (i32, i32) {
    %c0_i32 = arith.constant 0 : i32
    %c0_i32_0 = arith.constant 0 : i32
    return %arg0, %c0_i32 : i32, i32
  }
  func.func @transform_1(%arg0: i32) -> (i32, i32) {
    %c0_i32 = arith.constant 0 : i32
    %c0_i32_0 = arith.constant 0 : i32
    %c0_i32_1 = arith.constant 0 : i32
    return %c0_i32, %c0_i32_0 : i32, i32
  }
  func.func @transform_2(%arg0: i32) -> (i32, i32) {
    %c0_i32 = arith.constant 0 : i32
    %c0_i32_0 = arith.constant 0 : i32
    %c0_i32_1 = arith.constant 0 : i32
    return %c0_i32, %c0_i32_0 : i32, i32
  }
  func.func @transform_3(%arg0: i32) -> (i32, i32) {
    %c0_i32 = arith.constant 0 : i32
    %c0_i32_0 = arith.constant 0 : i32
    %c0_i32_1 = arith.constant 0 : i32
    return %c0_i32, %c0_i32_0 : i32, i32
  }
  func.func @transform_4(%arg0: i32) -> (i32, i32) {
    %c0_i32 = arith.constant 0 : i32
    %c0_i32_0 = arith.constant 0 : i32
    %c0_i32_1 = arith.constant 0 : i32
    return %c0_i32, %c0_i32_0 : i32, i32
  }
  func.func @transform_5(%arg0: i32) -> (i32, i32) {
    %c0_i32 = arith.constant 0 : i32
    %c0_i32_0 = arith.constant 0 : i32
    return %arg0, %c0_i32 : i32, i32
  }
  func.func @transform_6(%arg0: i32) -> (i32, i32) {
    %c0_i32 = arith.constant 0 : i32
    %c0_i32_0 = arith.constant 0 : i32
    return %arg0, %c0_i32 : i32, i32
  }
  func.func @transform_7(%arg0: i32) -> (i32, i32) {
    %c0_i32 = arith.constant 0 : i32
    %c0_i32_0 = arith.constant 0 : i32
    return %arg0, %c0_i32 : i32, i32
  }
  func.func @transform_8(%arg0: i32) -> (i32, i32) {
    %c0_i32 = arith.constant 0 : i32
    %c0_i32_0 = arith.constant 0 : i32
    return %arg0, %c0_i32 : i32, i32
  }
}

</mosaic_0001>

<bundles_post_ra>
// kernel: net_forward.1
= control target key start
LH: loop header
LB: loop body
LE: loop exit
PB: predicated region body
PF: predicated region fallthrough
CT: control target
= control target key end

     0   :  { %14 = vsyncpa [#allocation3], 0  ;;  %s409_s27 = smov [#allocation2]   ;;  %s497_s0 = inlined_call_operand.vmem [shape: f32[2,64], index: 0, kind: input, shape index: {}]   ;;  %s498_s1 = inlined_call_operand.hbm [shape: bf16[64,512], index: 1, kind: input, shape index: {}]   ;;  %s499_s2 = inlined_call_operand.vmem [shape: f32[1,512], index: 2, kind: input, shape index: {}]   ;;  %s500_s3 = inlined_call_operand.vmem [shape: f32[4,128], index: 3, kind: input, shape index: {}]   ;;  %s501_s4 = inlined_call_operand.vmem [shape: f32[1,4], index: 4, kind: input, shape index: {}]   ;;  %s502_s5 = inlined_call_operand.vmem [shape: f32[2,1], index: 5, kind: output, shape index: {0}]   ;;  %s503_s6 = inlined_call_operand.vmem [shape: f32[2,1], index: 6, kind: output, shape index: {1}]   ;;  %s504_s7 = inlined_call_operand.vmem [shape: f32[2,1], index: 7, kind: output, shape index: {2}]   ;;  %s505_s8 = inlined_call_operand.vmem [shape: f32[2,1], index: 8, kind: output, shape index: {3}]  }
   0x1   :  { %s22_s28 = sshll.u32 %s409_s27, 4  ;;  %s385_s9 = scalar_lea.hbm %s498_s1, 2048  ;;  %s23_s28 = int_to_ptr.vmem [resolvable:$true] %s22_s28 }
   0x2   :  { %p386_p0 = scmp.ne.s32.totalorder %s498_s1, %s385_s9  ;;  %p389_p1 = scmp.lt.u32.totalorder %s385_s9, %s498_s1 }
   0x4   :  { %p391_p2 = pnand %p389_p1, %p386_p0 }
   0x6   :  { %394 = shalt.err (!%p391_p2)
}
   0x7   :  { %s395_s14 = scalar_lea.vmem %s23_s28, 2048  ;;  %p400_p4 = scmp.lt.s32.totalorder %s23_s28, %s23_s28 }
   0x8   :  { %p396_p3 = scmp.ne.s32.totalorder %s23_s28, %s395_s14  ;;  %p401_p5 = scmp.lt.s32.totalorder %s395_s14, %s395_s14 }
   0xa   :  { %p402_p6 = por %p401_p5, %p400_p4 }
   0xc   :  { %p403_p7 = pnand %p402_p6, %p396_p3 }
   0xe   :  { %406 = shalt.err (!%p403_p7)
}
   0xf   :  { %s410_s15 = smov 256   ;;  %s411_s16 = smov 16  }
  0x10   :  { %28 = dma.hbm_to_vmem [thread:$0]  %s498_s1, 2048, %s23_s28, [#allocation3], %s410_s15, %s410_s15, %s411_s16  }
  0x11   :  { %407 = dma.done.wait [#allocation3], 2048  }
  0x12   :  { %408 = vsyncadd [#allocation3], 4294965248  ;;  %v412_v0 = vmov 0   ;;  %v361_v1 = vld [vmem:[#allocation2 + $0x4] ss:$16 sps:$4 sm:$0xff]   ;;  %vm159_vm0 = vcmask 523264   ;;  %v59_v19 = vlaneseq }
  0x13   :  { %195 = vmatprep.mubr.bf16.mxu0 %v412_v0  ;;  %236 = vmatprep.mubr.bf16.mxu1 %v412_v0  ;;  %v363_v2 = vld [vmem:[#allocation2] ss:$16 sps:$4 sm:$0xff]   ;;  %v364_v3 = vld [vmem:[#allocation2 + $0xc] ss:$16 sps:$4 sm:$0xff]   ;;  %v366_v4 = vld [vmem:[#allocation2 + $0x8] ss:$16 sps:$4 sm:$0xff]  }
  0x14   :  { %163 = vmatprep.subr.bf16.mxu0 %v361_v1  ;;  %v367_v5 = vld [vmem:[#allocation2 + $0x24] ss:$16 sps:$4 sm:$0xff]   ;;  %v369_v6 = vld [vmem:[#allocation2 + $0x20] ss:$16 sps:$4 sm:$0xff]   ;;  %204 = vmatprep.subr.bf16.mxu1 %v364_v3  ;;  %v370_v7 = vld [vmem:[#allocation2 + $0x2c] ss:$16 sps:$4 sm:$0xff]  }
  0x15   :  { %164 = vmatpush1.bf16.msra.mxu0 %v363_v2  ;;  %205 = vmatpush1.bf16.msra.mxu1 %v366_v4  ;;  %v372_v8 = vld [vmem:[#allocation2 + $0x28] ss:$16 sps:$4 sm:$0xff]   ;;  %v373_v9 = vld [vmem:[#allocation2 + $0x44] ss:$16 sps:$4 sm:$0xff]   ;;  %v375_v10 = vld [vmem:[#allocation2 + $0x40] ss:$16 sps:$4 sm:$0xff]  }
  0x16   :  { %165 = vmatprep.subr.bf16.mxu0 %v367_v5  ;;  %206 = vmatprep.subr.bf16.mxu1 %v370_v7  ;;  %v376_v11 = vld [vmem:[#allocation2 + $0x4c] ss:$16 sps:$4 sm:$0xff]   ;;  %v379_v12 = vld [vmem:[#allocation2 + $0x64] ss:$16 sps:$4 sm:$0xff]   ;;  %v378_v13 = vld [vmem:[#allocation2 + $0x48] ss:$16 sps:$4 sm:$0xff]  }
  0x17   :  { %v382_v14 = vld [vmem:[#allocation2 + $0x6c] ss:$16 sps:$4 sm:$0xff]   ;;  %v381_v15 = vld [vmem:[#allocation2 + $0x60] ss:$16 sps:$4 sm:$0xff]   ;;  %v384_v17 = vld [vmem:[#allocation2 + $0x68] ss:$16 sps:$4 sm:$0xff]  }
  0x18   :  { %v39_v16 = vld [vmem:[%s497_s0] sm:$0x3]  ;;  %v60_v20 = vshrl.u32 %v59_v19, 7  ;;  %vm256_vm1 = vcmask 1041408   ;;  %s413_s23 = smov 127   ;;  %s414_s24 = smov 126  }
  0x19   :  { %166 = vmatpush1.bf16.msra.mxu0 %v369_v6  ;;  %207 = vmatpush1.bf16.msra.mxu1 %v372_v8  ;;  %v40_v18 = vpack.c.bf16 %v39_v16, %v39_v16  ;;  %v57_v22 = vld [vmem:[%s499_s2] sm:$0xf]  ;;  %vm268_vm2 = vcmask 1024  }
  0x1a   :  { %167 = vmatprep.subr.bf16.mxu0 %v373_v9  ;;  %208 = vmatprep.subr.bf16.mxu1 %v376_v11  ;;  %v61_v21 = vsub.s32 0, %v60_v20  ;;  %v65_v23 = vsub.s32 1, %v60_v20  ;;  %v69_v24 = vsub.s32 2, %v60_v20  ;;  %v73_v25 = vsub.s32 3, %v60_v20  ;;  %v249_v40 = vld [vmem:[%s500_s3] sm:$0xf] }
  0x1b   :  { %v353_v62 = vld [vmem:[%s501_s4] ss:$0 sm:$0xff]  ;;  %s415_s4 = smov 125  }
  0x1c   :  { %v62_v26 = vrot.slane %v57_v22, %v61_v21  ;;  %v66_v27 = vrot.slane %v57_v22, %v65_v23  ;;  %v70_v28 = vrot.slane %v57_v22, %v69_v24  ;;  %v74_v30 = vrot.slane %v57_v22, %v73_v25 }
  0x1d   :  { %168 = vmatpush1.bf16.msra.mxu0 %v375_v10  ;;  %209 = vmatpush1.bf16.msra.mxu1 %v378_v13  ;;  %v274_v44 = vrot.slane %v249_v40, %v65_v23  ;;  %v290_v49 = vrot.slane %v249_v40, %v69_v24  ;;  %v306_v52 = vrot.slane %v249_v40, %v73_v25 }
  0x1e   :  { %169 = vmatprep.subr.bf16.mxu0 %v379_v12  ;;  %210 = vmatprep.subr.bf16.mxu1 %v382_v14  ;;  %v254_v56 = vrot.slane %v249_v40, %v61_v21 }
  0x21   :  { %170 = vmatpush1.bf16.msra.mxu0 %v381_v15  ;;  %211 = vmatpush1.bf16.msra.mxu1 %v384_v17 }
  0x24   :  { %351 = vmatmul.mubr.msk.bf16.vlgmr.msra.gmra.mrb[0].mxu0 %vm159_vm0, %v40_v18  ;;  %352 = vmatmul.mubr.msk.bf16.vlgmr.msra.gmra.mrb[0].mxu1 %vm159_vm0, %v40_v18 }
  0xf7   :  { %v197_v29 = vpop.f32.mrb[0].mxu0  ;;  %v238_v35 = vpop.f32.mrb[0].mxu1 }
  0xf8   :  { %v198_v31 = vadd.f32 %v197_v29, %v62_v26  ;;  %v199_v32 = vpop.f32.mrb[1].mxu0  ;;  %v239_v37 = vadd.f32 %v238_v35, %v70_v28  ;;  %v240_v39 = vpop.f32.mrb[1].mxu1 }
  0xf9   :  { %v200_v33 = vadd.f32 %v199_v32, %v66_v27  ;;  %v201_v34 = vpop.f32.mrb[2].mxu0  ;;  %v241_v42 = vadd.f32 %v240_v39, %v74_v30  ;;  %v242_v43 = vpop.f32.mrb[2].mxu1 }
  0xfa   :  { %v245_v36 = vmax.f32 %v198_v31, 0.0  ;;  %v202_v38 = vpop.f32.mrb[3].mxu0  ;;  %v247_v45 = vmax.f32 %v239_v37, 0.0  ;;  %v243_v46 = vpop.f32.mrb[3].mxu1 }
  0xfb   :  { %v246_v41 = vmax.f32 %v200_v33, 0.0  ;;  %v248_v48 = vmax.f32 %v241_v42, 0.0 }
  0xfc   :  { %v255_v60 = vmul.f32 %v254_v56, %v245_v36 }
  0xfd   :  { %v270_v47 = vadd.f32 %v246_v41, %v245_v36 }
  0xfe   :  { %v257_v61 = vsel %vm256_vm1, %v255_v60, 0.0 }
  0xff   :  { %v286_v50 = vadd.f32 %v270_v47, %v247_v45  ;;  %v275_v51 = vmul.f32 %v274_v44, %v270_v47 }
 0x101   :  { %v302_v53 = vadd.f32 %v286_v50, %v248_v48  ;;  %v276_v54 = vsel %vm256_vm1, %v275_v51, 0.0  ;;  %v291_v55 = vmul.f32 %v290_v49, %v286_v50 }
 0x102   :  { %277 = vadd.xlane.f32.xlu0 %v276_v54 }
 0x103   :  { %v307_v57 = vmul.f32 %v306_v52, %v302_v53  ;;  %v292_v59 = vsel %vm256_vm1, %v291_v55, 0.0 }
 0x105   :  { %v308_v58 = vsel %vm256_vm1, %v307_v57, 0.0 }
 0x106   :  { %309 = vadd.xlane.f32.xlu1 %v308_v58  ;;  %293 = vadd.xlane.f32.xlu0 %v292_v59 }
 0x10a   :  { %258 = vadd.xlane.f32.xlu1 %v257_v61 }
 0x18f   :  { %v278_v63 = vpop.xlane.xlu0 %277 }
 0x190   :  { %v279_v0 = vadd.f32 %v353_v62, %v278_v63 }
 0x192   :  { %v280_v1 = vmax.f32 %v279_v0, 0.0 }
 0x193   :  { %v310_v2 = vpop.xlane.xlu1 %309  ;;  %v294_v3 = vpop.xlane.xlu0 %293 }
 0x194   :  { %v295_v4 = vadd.f32 %v353_v62, %v294_v3  ;;  %282 = vrot.lane.b32.xlu0 %v280_v1, %s413_s23  ;;  %v311_v5 = vadd.f32 %v353_v62, %v310_v2 }
 0x196   :  { %v296_v6 = vmax.f32 %v295_v4, 0.0  ;;  %v312_v9 = vmax.f32 %v311_v5, 0.0 }
 0x197   :  { %v259_v7 = vpop.xlane.xlu1 %258 }
 0x198   :  { %v266_v8 = vadd.f32 %v353_v62, %v259_v7  ;;  %298 = vrot.lane.b32.xlu1 %v296_v6, %s414_s24 }
 0x19a   :  { %v267_v10 = vmax.f32 %v266_v8, 0.0 }
 0x19c   :  { %269 = vst.msk [vmem:[%s502_s5] sm:$0x3] %vm268_vm2, %v267_v10  ;;  %314 = vrot.lane.b32.xlu1 %v312_v9, %s415_s4 }
 0x206   :  { %v283_v11 = vpop.permute.xlu0 %282 }
 0x207   :  { %285 = vst.msk [vmem:[%s503_s6] sm:$0x3] %vm268_vm2, %v283_v11 }
 0x20a   :  { %v299_v12 = vpop.permute.xlu1 %298 }
 0x20b   :  { %301 = vst.msk [vmem:[%s504_s7] sm:$0x3] %vm268_vm2, %v299_v12 }
 0x20e   :  { %v315_v13 = vpop.permute.xlu1 %314 }
 0x20f   :  { %317 = vst.msk [vmem:[%s505_s8] sm:$0x3] %vm268_vm2, %v315_v13 }
 0x210   :  { %334 = vsyncpa [#allocation3], 1 }

</bundles_post_ra>
